<compile_context>
chip_gen: v7x
topology: tpu7x:2x2x1
jax: 0.10.0
libtpu: 0.0.40
codegen_flags: <defaults>
</compile_context>

<pallas_src>
from functools import partial

import numpy as np
import jax
import jax.numpy as jnp
from jax.experimental import pallas as pl
from jax.experimental.pallas import tpu as pltpu


# ---------------------------------------------------------------------------
# Kernels
# ---------------------------------------------------------------------------

def _generic_block_kernel_rowmajor(
    x_ref,                              # (TB, backcast_length)
    w1_ref, b1_ref,                     # (in, out), (1, out)
    w2_ref, b2_ref,
    w3_ref, b3_ref,
    w4_ref, b4_ref,
    wtheta_ref,                         # (units, 2*td) = [W_theta_b | W_theta_f]
    wout_ref,                           # (2*td, total) block-diag [[Wb,0],[0,Wf]]
    bout_ref,                           # (1, total)    = [b_backcast | b_forecast]
    out_ref,                            # (TB, total)
):
    def dense(x, w_ref, b_ref=None, relu=True):
        w = w_ref[...]
        # cast only at the dot boundary (bf16 fast path on v6e/v7x);
        # bias-add / ReLU stay f32 (v5e VPU/EUP have no bf16).
        y = jnp.dot(x.astype(w.dtype), w, preferred_element_type=jnp.float32)
        if b_ref is not None:
            y = y + b_ref[...]
        return jnp.maximum(y, 0.0) if relu else y

    h = dense(x_ref[...], w1_ref, b1_ref)
    h = dense(h, w2_ref, b2_ref)
    h = dense(h, w3_ref, b3_ref)
    h = dense(h, w4_ref, b4_ref)
    theta = dense(h, wtheta_ref)                      # relu(h @ [Wtb|Wtf])
    out_ref[...] = dense(theta, wout_ref, bout_ref, relu=False)


def _generic_block_kernel_lanes(
    x_ref,                              # (backcast_length, TB)   batch on lanes
    w1_ref, b1_ref,                     # (out, in), (out, 1)  (native nn.Linear)
    w2_ref, b2_ref,
    w3_ref, b3_ref,
    w4_ref, b4_ref,
    wtheta_ref,                         # (2*td, units)
    wout_ref,                           # (total, 2*td) block-diag
    bout_ref,                           # (total, 1)
    out_ref,                            # (total, TB)
):
    def dense(x, w_ref, b_ref=None, relu=True):
        w = w_ref[...]
        y = jnp.dot(w, x.astype(w.dtype), preferred_element_type=jnp.float32)
        if b_ref is not None:
            y = y + b_ref[...]
        return jnp.maximum(y, 0.0) if relu else y

    h = dense(x_ref[...], w1_ref, b1_ref)
    h = dense(h, w2_ref, b2_ref)
    h = dense(h, w3_ref, b3_ref)
    h = dense(h, w4_ref, b4_ref)
    theta = dense(h, wtheta_ref)
    out_ref[...] = dense(theta, wout_ref, bout_ref, relu=False)


# ---------------------------------------------------------------------------
# Parameter preparation (hoisted out of the per-call path)
# ---------------------------------------------------------------------------

def prepare_params(params, backcast_length, forecast_length, *,
                   batch_on_lanes=False, use_bf16=False):
    """Fuse / re-layout native nn.Linear params once, outside the forward.

    params are native PyTorch layout: W (out_features, in_features), b (out_features,).
    """
    (w1, b1, w2, b2, w3, b3, w4, b4, wtb, wtf, wb, bb, wf, bf) = params
    td = wtb.shape[0]
    total = backcast_length + forecast_length
    mm_dtype = jnp.bfloat16 if use_bf16 else jnp.float32
    f32 = jnp.float32

    if batch_on_lanes:
        # batch on lanes: y = W @ x_T, weights stay (out, in), biases are columns.
        wtheta = jnp.concatenate([wtb, wtf], axis=0)                 # (2*td, units)
        wout = jnp.zeros((total, 2 * td), f32)
        wout = wout.at[:backcast_length, :td].set(wb)
        wout = wout.at[backcast_length:, td:].set(wf)
        bout = jnp.concatenate([bb, bf], axis=0)[:, None]            # (total, 1)
        mats = (w1, w2, w3, w4, wtheta, wout)
        vecs = (b1[:, None], b2[:, None], b3[:, None], b4[:, None], bout)
    else:
        # batch on sublanes: y = x @ W_T, weights pre-transposed to (in, out).
        wtheta = jnp.concatenate([wtb.T, wtf.T], axis=1)             # (units, 2*td)
        wout = jnp.zeros((2 * td, total), f32)
        wout = wout.at[:td, :backcast_length].set(wb.T)
        wout = wout.at[td:, backcast_length:].set(wf.T)
        bout = jnp.concatenate([bb, bf], axis=0)[None, :]            # (1, total)
        mats = (w1.T, w2.T, w3.T, w4.T, wtheta, wout)
        vecs = (b1[None, :], b2[None, :], b3[None, :], b4[None, :], bout)

    mats = tuple(m.astype(mm_dtype) for m in mats)   # matmul operands (f32 or bf16)
    vecs = tuple(v.astype(f32) for v in vecs)        # bias adds always f32
    w1m, w2m, w3m, w4m, wthetam, woutm = mats
    b1m, b2m, b3m, b4m, boutm = vecs
    return (w1m, b1m, w2m, b2m, w3m, b3m, w4m, b4m, wthetam, woutm, boutm)


# ---------------------------------------------------------------------------
# Forward wrapper
# ---------------------------------------------------------------------------

def _pick_block_b(batch, batch_on_lanes):
    """Batch tile: multiple of 8 (sublanes) or 128 (lanes); >=2 grid steps when
    the batch allows (v7x 2-TC sharding); capped at 2048 (>=512-row tiles are
    already ~85% of HBM roofline and VMEM use here is tiny)."""
    align = 128 if batch_on_lanes else 8
    rup = lambda v: -(-v // align) * align
    if batch <= 2 * align:
        return rup(batch)
    return min(2048, rup(-(-batch // 2)))


@partial(jax.jit, static_argnames=("backcast_length", "forecast_length",
                                   "block_b", "batch_on_lanes"))
def generic_block_forward(x, prepared, *, backcast_length, forecast_length,
                          block_b=None, batch_on_lanes=False):
    (w1, b1, w2, b2, w3, b3, w4, b4, wtheta, wout, bout) = prepared
    B = x.shape[0]
    total = backcast_length + forecast_length
    units = w1.shape[0] if batch_on_lanes else w1.shape[1]
    td2 = wtheta.shape[0] if batch_on_lanes else wtheta.shape[1]

    if block_b is None:
        block_b = _pick_block_b(B, batch_on_lanes)
    grid = (pl.cdiv(B, block_b),)   # partial final block handled by Pallas masking

    weights = (w1, b1, w2, b2, w3, b3, w4, b4, wtheta, wout, bout)
    # Constant index_maps -> weights stay VMEM-resident across grid steps.
    const_specs = [pl.BlockSpec(w.shape, lambda i: (0, 0)) for w in weights]

    flops = 2 * B * (backcast_length * units + 3 * units * units
                     + units * td2 + td2 * total)
    wbytes = sum(int(np.prod(w.shape)) * int(w.dtype.itemsize) for w in weights)
    cost = pl.CostEstimate(
        flops=int(flops),
        transcendentals=0,
        bytes_accessed=int(4 * B * (backcast_length + total) + wbytes),
    )

    if batch_on_lanes:
        x_in = x.T                                                   # (bcl, B)
        in_x_spec = pl.BlockSpec((backcast_length, block_b), lambda i: (0, i))
        out_spec = pl.BlockSpec((total, block_b), lambda i: (0, i))
        out_shape = jax.ShapeDtypeStruct((total, B), jnp.float32)
        kernel = _generic_block_kernel_lanes
    else:
        x_in = x                                                     # (B, bcl)
        in_x_spec = pl.BlockSpec((block_b, backcast_length), lambda i: (i, 0))
        out_spec = pl.BlockSpec((block_b, total), lambda i: (i, 0))
        out_shape = jax.ShapeDtypeStruct((B, total), jnp.float32)
        kernel = _generic_block_kernel_rowmajor

    out = pl.pallas_call(
        kernel,
        out_shape=out_shape,
        grid_spec=pltpu.PrefetchScalarGridSpec(
            num_scalar_prefetch=0,
            grid=grid,
            in_specs=[in_x_spec] + const_specs,
            out_specs=out_spec,
        ),
        compiler_params=pltpu.CompilerParams(
            dimension_semantics=("parallel",),
        ),
        cost_estimate=cost,
    )(x_in, *weights)

    if batch_on_lanes:
        return out[:backcast_length].T, out[backcast_length:].T
    return out[:, :backcast_length], out[:, backcast_length:]


# ---------------------------------------------------------------------------
# Parameter init + pure-jnp reference (native nn.Linear layout)
# ---------------------------------------------------------------------------

def init_params(key, units, thetas_dim, backcast_length, forecast_length):
    """Deterministic synthetic params in native nn.Linear layout: W (out,in), b (out,)."""
    ks = jax.random.split(key, 8)

    def lin(k, fan_in, fan_out, with_bias=True):
        bound = 1.0 / np.sqrt(fan_in)
        kw, kb = jax.random.split(k)
        w = jax.random.uniform(kw, (fan_out, fan_in), jnp.float32, -bound, bound)
        if not with_bias:
            return w
        b = jax.random.uniform(kb, (fan_out,), jnp.float32, -bound, bound)
        return w, b

    w1, b1 = lin(ks[0], backcast_length, units)
    w2, b2 = lin(ks[1], units, units)
    w3, b3 = lin(ks[2], units, units)
    w4, b4 = lin(ks[3], units, units)
    wtb = lin(ks[4], units, thetas_dim, with_bias=False)   # share_thetas=False
    wtf = lin(ks[5], units, thetas_dim, with_bias=False)
    wb, bb = lin(ks[6], thetas_dim, backcast_length)
    wf, bf = lin(ks[7], thetas_dim, forecast_length)
    return (w1, b1, w2, b2, w3, b3, w4, b4, wtb, wtf, wb, bb, wf, bf)


def reference_forward(x, params):
    """Pure-jnp reference matching GenericBlock.forward exactly."""
    (w1, b1, w2, b2, w3, b3, w4, b4, wtb, wtf, wb, bb, wf, bf) = params
    h = jnp.maximum(x @ w1.T + b1, 0.0)
    h = jnp.maximum(h @ w2.T + b2, 0.0)
    h = jnp.maximum(h @ w3.T + b3, 0.0)
    h = jnp.maximum(h @ w4.T + b4, 0.0)
    theta_b = jnp.maximum(h @ wtb.T, 0.0)
    theta_f = jnp.maximum(h @ wtf.T, 0.0)
    backcast = theta_b @ wb.T + bb
    forecast = theta_f @ wf.T + bf
    return backcast, forecast


# ---------------------------------------------------------------------------
if __name__ == "__main__":
    units = 32
    thetas_dim = 4
    backcast_length = 16
    forecast_length = 8

    key = jax.random.PRNGKey(0)
    kp, kx1, kx2, kx3 = jax.random.split(key, 4)
    params = init_params(kp, units, thetas_dim, backcast_length, forecast_length)

    # 1) small batch, f32, batch-on-sublanes (default) layout
    x1 = jax.random.normal(kx1, (8, backcast_length), jnp.float32)
    prep = prepare_params(params, backcast_length, forecast_length)
    bc1, fc1 = generic_block_forward(
        x1, prep, backcast_length=backcast_length, forecast_length=forecast_length)
    jax.block_until_ready((bc1, fc1))
    bc1_r, fc1_r = reference_forward(x1, params)
    np.testing.assert_allclose(np.asarray(bc1), np.asarray(bc1_r), rtol=1e-4, atol=1e-4)
    np.testing.assert_allclose(np.asarray(fc1), np.asarray(fc1_r), rtol=1e-4, atol=1e-4)

    # 2) non-multiple batch, multi-step grid, no wrapper pad/slice (masked final block)
    x2 = jax.random.normal(kx2, (100, backcast_length), jnp.float32)
    bc2, fc2 = generic_block_forward(
        x2, prep, backcast_length=backcast_length, forecast_length=forecast_length)
    jax.block_until_ready((bc2, fc2))
    bc2_r, fc2_r = reference_forward(x2, params)
    np.testing.assert_allclose(np.asarray(bc2), np.asarray(bc2_r), rtol=1e-4, atol=1e-4)
    np.testing.assert_allclose(np.asarray(fc2), np.asarray(fc2_r), rtol=1e-4, atol=1e-4)

    # 3) batch-on-lanes (transposed) layout — the large-batch fast path, f32
    x3 = jax.random.normal(kx3, (300, backcast_length), jnp.float32)
    prep_lanes = prepare_params(params, backcast_length, forecast_length,
                                batch_on_lanes=True)
    bc3, fc3 = generic_block_forward(
        x3, prep_lanes, backcast_length=backcast_length, forecast_length=forecast_length,
        batch_on_lanes=True)
    jax.block_until_ready((bc3, fc3))
    bc3_r, fc3_r = reference_forward(x3, params)
    np.testing.assert_allclose(np.asarray(bc3), np.asarray(bc3_r), rtol=1e-4, atol=1e-4)
    np.testing.assert_allclose(np.asarray(fc3), np.asarray(fc3_r), rtol=1e-4, atol=1e-4)

    # 4) bf16 MXU inputs (opt-in v6e/v7x fast path), loose tolerance for the cast
    prep_bf16 = prepare_params(params, backcast_length, forecast_length,
                               batch_on_lanes=True, use_bf16=True)
    bc4, fc4 = generic_block_forward(
        x3, prep_bf16, backcast_length=backcast_length, forecast_length=forecast_length,
        batch_on_lanes=True)
    jax.block_until_ready((bc4, fc4))
    np.testing.assert_allclose(np.asarray(bc4), np.asarray(bc3_r), rtol=1e-1, atol=1e-1)
    np.testing.assert_allclose(np.asarray(fc4), np.asarray(fc3_r), rtol=1e-1, atol=1e-1)

    print("KERNEL_OK")
</pallas_src>

<mosaic_0001>
module attributes {stable_mosaic.version = 11 : i64} {
  func.func @_generic_block_kernel_rowmajor(%arg0: i32, %arg1: memref<8x16xf32, #tpu.memory_space<vmem>>, %arg2: memref<16x32xf32, #tpu.memory_space<vmem>>, %arg3: memref<1x32xf32, #tpu.memory_space<vmem>>, %arg4: memref<32x32xf32, #tpu.memory_space<vmem>>, %arg5: memref<1x32xf32, #tpu.memory_space<vmem>>, %arg6: memref<32x32xf32, #tpu.memory_space<vmem>>, %arg7: memref<1x32xf32, #tpu.memory_space<vmem>>, %arg8: memref<32x32xf32, #tpu.memory_space<vmem>>, %arg9: memref<1x32xf32, #tpu.memory_space<vmem>>, %arg10: memref<32x8xf32, #tpu.memory_space<vmem>>, %arg11: memref<8x24xf32, #tpu.memory_space<vmem>>, %arg12: memref<1x24xf32, #tpu.memory_space<vmem>>, %arg13: memref<8x24xf32, #tpu.memory_space<vmem>>) attributes {dimension_semantics = [#tpu.dimension_semantics<parallel>], iteration_bounds = array<i64: 1>, scalar_prefetch = 0 : i64, scratch_operands = 0 : i64, tpu.core_type = #tpu.core_type<tc>, window_params = [{transform_indices = @transform_0, window_bounds = array<i64: 8, 16>}, {pipeline_mode = #tpu.pipeline_mode<synchronous>, transform_indices = @transform_1, window_bounds = array<i64: 16, 32>}, {pipeline_mode = #tpu.pipeline_mode<synchronous>, transform_indices = @transform_2, window_bounds = array<i64: 1, 32>}, {pipeline_mode = #tpu.pipeline_mode<synchronous>, transform_indices = @transform_3, window_bounds = array<i64: 32, 32>}, {pipeline_mode = #tpu.pipeline_mode<synchronous>, transform_indices = @transform_4, window_bounds = array<i64: 1, 32>}, {pipeline_mode = #tpu.pipeline_mode<synchronous>, transform_indices = @transform_5, window_bounds = array<i64: 32, 32>}, {pipeline_mode = #tpu.pipeline_mode<synchronous>, transform_indices = @transform_6, window_bounds = array<i64: 1, 32>}, {pipeline_mode = #tpu.pipeline_mode<synchronous>, transform_indices = @transform_7, window_bounds = array<i64: 32, 32>}, {pipeline_mode = #tpu.pipeline_mode<synchronous>, transform_indices = @transform_8, window_bounds = array<i64: 1, 32>}, {pipeline_mode = #tpu.pipeline_mode<synchronous>, transform_indices = @transform_9, window_bounds = array<i64: 32, 8>}, {pipeline_mode = #tpu.pipeline_mode<synchronous>, transform_indices = @transform_10, window_bounds = array<i64: 8, 24>}, {pipeline_mode = #tpu.pipeline_mode<synchronous>, transform_indices = @transform_11, window_bounds = array<i64: 1, 24>}, {transform_indices = @transform_12, window_bounds = array<i64: 8, 24>}]} {
    %c0 = arith.constant 0 : index
    %c0_0 = arith.constant 0 : index
    %0 = vector.load %arg1[%c0, %c0_0] : memref<8x16xf32, #tpu.memory_space<vmem>>, vector<8x16xf32>
    %c0_1 = arith.constant 0 : index
    %c0_2 = arith.constant 0 : index
    %1 = vector.load %arg2[%c0_1, %c0_2] : memref<16x32xf32, #tpu.memory_space<vmem>>, vector<16x32xf32>
    %cst = arith.constant dense<0.000000e+00> : vector<8x32xf32>
    %2 = tpu.matmul %0, %1, %cst {dimension_numbers = #tpu.dot_dimension_numbers<[1], [0], [0], [1], [0, 0, 1, 1], [], []>} : vector<8x16xf32>, vector<16x32xf32>, vector<8x32xf32> -> vector<8x32xf32>
    %c0_3 = arith.constant 0 : index
    %c0_4 = arith.constant 0 : index
    %3 = vector.load %arg3[%c0_3, %c0_4] : memref<1x32xf32, #tpu.memory_space<vmem>>, vector<1x32xf32>
    %4 = vector.broadcast %3 : vector<1x32xf32> to vector<8x32xf32>
    %5 = arith.addf %2, %4 : vector<8x32xf32>
    %cst_5 = arith.constant 0.000000e+00 : f32
    %6 = vector.broadcast %cst_5 : f32 to vector<8x32xf32>
    %7 = arith.maximumf %5, %6 : vector<8x32xf32>
    %c0_6 = arith.constant 0 : index
    %c0_7 = arith.constant 0 : index
    %8 = vector.load %arg4[%c0_6, %c0_7] : memref<32x32xf32, #tpu.memory_space<vmem>>, vector<32x32xf32>
    %cst_8 = arith.constant dense<0.000000e+00> : vector<8x32xf32>
    %9 = tpu.matmul %7, %8, %cst_8 {dimension_numbers = #tpu.dot_dimension_numbers<[1], [0], [0], [1], [0, 0, 1, 1], [], []>} : vector<8x32xf32>, vector<32x32xf32>, vector<8x32xf32> -> vector<8x32xf32>
    %c0_9 = arith.constant 0 : index
    %c0_10 = arith.constant 0 : index
    %10 = vector.load %arg5[%c0_9, %c0_10] : memref<1x32xf32, #tpu.memory_space<vmem>>, vector<1x32xf32>
    %11 = vector.broadcast %10 : vector<1x32xf32> to vector<8x32xf32>
    %12 = arith.addf %9, %11 : vector<8x32xf32>
    %cst_11 = arith.constant 0.000000e+00 : f32
    %13 = vector.broadcast %cst_11 : f32 to vector<8x32xf32>
    %14 = arith.maximumf %12, %13 : vector<8x32xf32>
    %c0_12 = arith.constant 0 : index
    %c0_13 = arith.constant 0 : index
    %15 = vector.load %arg6[%c0_12, %c0_13] : memref<32x32xf32, #tpu.memory_space<vmem>>, vector<32x32xf32>
    %cst_14 = arith.constant dense<0.000000e+00> : vector<8x32xf32>
    %16 = tpu.matmul %14, %15, %cst_14 {dimension_numbers = #tpu.dot_dimension_numbers<[1], [0], [0], [1], [0, 0, 1, 1], [], []>} : vector<8x32xf32>, vector<32x32xf32>, vector<8x32xf32> -> vector<8x32xf32>
    %c0_15 = arith.constant 0 : index
    %c0_16 = arith.constant 0 : index
    %17 = vector.load %arg7[%c0_15, %c0_16] : memref<1x32xf32, #tpu.memory_space<vmem>>, vector<1x32xf32>
    %18 = vector.broadcast %17 : vector<1x32xf32> to vector<8x32xf32>
    %19 = arith.addf %16, %18 : vector<8x32xf32>
    %cst_17 = arith.constant 0.000000e+00 : f32
    %20 = vector.broadcast %cst_17 : f32 to vector<8x32xf32>
    %21 = arith.maximumf %19, %20 : vector<8x32xf32>
    %c0_18 = arith.constant 0 : index
    %c0_19 = arith.constant 0 : index
    %22 = vector.load %arg8[%c0_18, %c0_19] : memref<32x32xf32, #tpu.memory_space<vmem>>, vector<32x32xf32>
    %cst_20 = arith.constant dense<0.000000e+00> : vector<8x32xf32>
    %23 = tpu.matmul %21, %22, %cst_20 {dimension_numbers = #tpu.dot_dimension_numbers<[1], [0], [0], [1], [0, 0, 1, 1], [], []>} : vector<8x32xf32>, vector<32x32xf32>, vector<8x32xf32> -> vector<8x32xf32>
    %c0_21 = arith.constant 0 : index
    %c0_22 = arith.constant 0 : index
    %24 = vector.load %arg9[%c0_21, %c0_22] : memref<1x32xf32, #tpu.memory_space<vmem>>, vector<1x32xf32>
    %25 = vector.broadcast %24 : vector<1x32xf32> to vector<8x32xf32>
    %26 = arith.addf %23, %25 : vector<8x32xf32>
    %cst_23 = arith.constant 0.000000e+00 : f32
    %27 = vector.broadcast %cst_23 : f32 to vector<8x32xf32>
    %28 = arith.maximumf %26, %27 : vector<8x32xf32>
    %c0_24 = arith.constant 0 : index
    %c0_25 = arith.constant 0 : index
    %29 = vector.load %arg10[%c0_24, %c0_25] : memref<32x8xf32, #tpu.memory_space<vmem>>, vector<32x8xf32>
    %cst_26 = arith.constant dense<0.000000e+00> : vector<8x8xf32>
    %30 = tpu.matmul %28, %29, %cst_26 {dimension_numbers = #tpu.dot_dimension_numbers<[1], [0], [0], [1], [0, 0, 1, 1], [], []>} : vector<8x32xf32>, vector<32x8xf32>, vector<8x8xf32> -> vector<8x8xf32>
    %cst_27 = arith.constant 0.000000e+00 : f32
    %31 = vector.broadcast %cst_27 : f32 to vector<8x8xf32>
    %32 = arith.maximumf %30, %31 : vector<8x8xf32>
    %c0_28 = arith.constant 0 : index
    %c0_29 = arith.constant 0 : index
    %33 = vector.load %arg11[%c0_28, %c0_29] : memref<8x24xf32, #tpu.memory_space<vmem>>, vector<8x24xf32>
    %cst_30 = arith.constant dense<0.000000e+00> : vector<8x24xf32>
    %34 = tpu.matmul %32, %33, %cst_30 {dimension_numbers = #tpu.dot_dimension_numbers<[1], [0], [0], [1], [0, 0, 1, 1], [], []>} : vector<8x8xf32>, vector<8x24xf32>, vector<8x24xf32> -> vector<8x24xf32>
    %c0_31 = arith.constant 0 : index
    %c0_32 = arith.constant 0 : index
    %35 = vector.load %arg12[%c0_31, %c0_32] : memref<1x24xf32, #tpu.memory_space<vmem>>, vector<1x24xf32>
    %36 = vector.broadcast %35 : vector<1x24xf32> to vector<8x24xf32>
    %37 = arith.addf %34, %36 : vector<8x24xf32>
    %c0_33 = arith.constant 0 : index
    %c0_34 = arith.constant 0 : index
    %38 = vector.load %arg13[%c0_33, %c0_34] : memref<8x24xf32, #tpu.memory_space<vmem>>, vector<8x24xf32>
    tpu.vector_store %arg13[%c0_33, %c0_34], %37 {strides = array<i32>} : memref<8x24xf32, #tpu.memory_space<vmem>>, vector<8x24xf32>,
    return
  }
  func.func @transform_0(%arg0: i32) -> (i32, i32) {
    %c0_i32 = arith.constant 0 : i32
    %c0_i32_0 = arith.constant 0 : i32
    return %arg0, %c0_i32 : i32, i32
  }
  func.func @transform_1(%arg0: i32) -> (i32, i32) {
    %c0_i32 = arith.constant 0 : i32
    %c0_i32_0 = arith.constant 0 : i32
    %c0_i32_1 = arith.constant 0 : i32
    return %c0_i32, %c0_i32_0 : i32, i32
  }
  func.func @transform_2(%arg0: i32) -> (i32, i32) {
    %c0_i32 = arith.constant 0 : i32
    %c0_i32_0 = arith.constant 0 : i32
    %c0_i32_1 = arith.constant 0 : i32
    return %c0_i32, %c0_i32_0 : i32, i32
  }
  func.func @transform_3(%arg0: i32) -> (i32, i32) {
    %c0_i32 = arith.constant 0 : i32
    %c0_i32_0 = arith.constant 0 : i32
    %c0_i32_1 = arith.constant 0 : i32
    return %c0_i32, %c0_i32_0 : i32, i32
  }
  func.func @transform_4(%arg0: i32) -> (i32, i32) {
    %c0_i32 = arith.constant 0 : i32
    %c0_i32_0 = arith.constant 0 : i32
    %c0_i32_1 = arith.constant 0 : i32
    return %c0_i32, %c0_i32_0 : i32, i32
  }
  func.func @transform_5(%arg0: i32) -> (i32, i32) {
    %c0_i32 = arith.constant 0 : i32
    %c0_i32_0 = arith.constant 0 : i32
    %c0_i32_1 = arith.constant 0 : i32
    return %c0_i32, %c0_i32_0 : i32, i32
  }
  func.func @transform_6(%arg0: i32) -> (i32, i32) {
    %c0_i32 = arith.constant 0 : i32
    %c0_i32_0 = arith.constant 0 : i32
    %c0_i32_1 = arith.constant 0 : i32
    return %c0_i32, %c0_i32_0 : i32, i32
  }
  func.func @transform_7(%arg0: i32) -> (i32, i32) {
    %c0_i32 = arith.constant 0 : i32
    %c0_i32_0 = arith.constant 0 : i32
    %c0_i32_1 = arith.constant 0 : i32
    return %c0_i32, %c0_i32_0 : i32, i32
  }
  func.func @transform_8(%arg0: i32) -> (i32, i32) {
    %c0_i32 = arith.constant 0 : i32
    %c0_i32_0 = arith.constant 0 : i32
    %c0_i32_1 = arith.constant 0 : i32
    return %c0_i32, %c0_i32_0 : i32, i32
  }
  func.func @transform_9(%arg0: i32) -> (i32, i32) {
    %c0_i32 = arith.constant 0 : i32
    %c0_i32_0 = arith.constant 0 : i32
    %c0_i32_1 = arith.constant 0 : i32
    return %c0_i32, %c0_i32_0 : i32, i32
  }
  func.func @transform_10(%arg0: i32) -> (i32, i32) {
    %c0_i32 = arith.constant 0 : i32
    %c0_i32_0 = arith.constant 0 : i32
    %c0_i32_1 = arith.constant 0 : i32
    return %c0_i32, %c0_i32_0 : i32, i32
  }
  func.func @transform_11(%arg0: i32) -> (i32, i32) {
    %c0_i32 = arith.constant 0 : i32
    %c0_i32_0 = arith.constant 0 : i32
    %c0_i32_1 = arith.constant 0 : i32
    return %c0_i32, %c0_i32_0 : i32, i32
  }
  func.func @transform_12(%arg0: i32) -> (i32, i32) {
    %c0_i32 = arith.constant 0 : i32
    %c0_i32_0 = arith.constant 0 : i32
    return %arg0, %c0_i32 : i32, i32
  }
}

</mosaic_0001>

<bundles_post_ra>
// kernel: generic_block_forward.1
= control target key start
LH: loop header
LB: loop body
LE: loop exit
PB: predicated region body
PF: predicated region fallthrough
CT: control target
= control target key end

     0   :  { %17 = vsyncpa [#allocation3], 0  ;;  %s1124_s0 = inlined_call_operand.hbm [shape: f32[8,16], index: 0, kind: input, shape index: {}]   ;;  %s1125_s1 = inlined_call_operand.hbm [shape: f32[16,32], index: 1, kind: input, shape index: {}]   ;;  %s1126_s2 = inlined_call_operand.vmem [shape: f32[1,32], index: 2, kind: input, shape index: {}]   ;;  %s1127_s3 = inlined_call_operand.vmem [shape: f32[32,32], index: 3, kind: input, shape index: {}]   ;;  %s1128_s4 = inlined_call_operand.vmem [shape: f32[1,32], index: 4, kind: input, shape index: {}]   ;;  %s1129_s5 = inlined_call_operand.hbm [shape: f32[32,32], index: 5, kind: input, shape index: {}]   ;;  %s1130_s6 = inlined_call_operand.hbm [shape: f32[1,32], index: 6, kind: input, shape index: {}]   ;;  %s1131_s7 = inlined_call_operand.vmem [shape: f32[32,32], index: 7, kind: input, shape index: {}]   ;;  %s1132_s8 = inlined_call_operand.hbm [shape: f32[1,32], index: 8, kind: input, shape index: {}]   ;;  %s1133_s9 = inlined_call_operand.vmem [shape: f32[32,8], index: 9, kind: input, shape index: {}]   ;;  %s1134_s10 = inlined_call_operand.hbm [shape: f32[8,24], index: 10, kind: input, shape index: {}]   ;;  %s1135_s11 = inlined_call_operand.vmem [shape: f32[1,24], index: 11, kind: input, shape index: {}]   ;;  %s1136_s12 = inlined_call_operand.vmem [shape: f32[8,24], index: 12, kind: output, shape index: {}]  }
   0x1   :  { %18 = vsyncpa [#allocation5], 0 }
   0x2   :  { %19 = vsyncpa [#allocation8], 0 }
   0x3   :  { %20 = vsyncpa [#allocation11], 0  ;;  %s896_s21 = smov [#allocation4]   ;;  %s756_s25 = scalar_lea.hbm %s1125_s1, 256 }
   0x4   :  { %s36_s22 = sshll.u32 %s896_s21, 4  ;;  %p757_p0 = scmp.ne.s32.totalorder %s1125_s1, %s756_s25  ;;  %s37_s22 = int_to_ptr.vmem [resolvable:$true] %s36_s22 }
   0x5   :  { %p760_p1 = scmp.lt.u32.totalorder %s756_s25, %s1125_s1 }
   0x7   :  { %p762_p2 = pnand %p760_p1, %p757_p0 }
   0x9   :  { %765 = shalt.err (!%p762_p2)
}
   0xa   :  { %s766_s30 = scalar_lea.vmem %s37_s22, 256  ;;  %p771_p4 = scmp.lt.s32.totalorder %s37_s22, %s37_s22 }
   0xb   :  { %p767_p3 = scmp.ne.s32.totalorder %s37_s22, %s766_s30  ;;  %p772_p5 = scmp.lt.s32.totalorder %s766_s30, %s766_s30 }
   0xd   :  { %p773_p6 = por %p772_p5, %p771_p4 }
   0xf   :  { %p774_p7 = pnand %p773_p6, %p767_p3 }
  0x11   :  { %777 = shalt.err (!%p774_p7)
}
  0x12   :  { %s897_s13 = smov 128   ;;  %s898_s14 = smov 8  }
  0x13   :  { %42 = dma.hbm_to_vmem [thread:$0]  %s1125_s1, 256, %s37_s22, [#allocation5], %s897_s13, %s897_s13, %s898_s14  }
  0x14   :  { %s899_s17 = smov [#allocation7]   ;;  %s900_s19 = smov [#allocation2]  }
  0x15   :  { %s67_s18 = sshll.u32 %s899_s17, 4  ;;  %s27_s20 = sshll.u32 %s900_s19, 4  ;;  %s68_s18 = int_to_ptr.vmem [resolvable:$true] %s67_s18  ;;  %s28_s20 = int_to_ptr.vmem [resolvable:$true] %s27_s20 }
  0x16   :  { %s778_s24 = scalar_lea.hbm %s1130_s6, 16 }
  0x17   :  { %p779_p8 = scmp.ne.s32.totalorder %s1130_s6, %s778_s24  ;;  %p782_p9 = scmp.lt.u32.totalorder %s778_s24, %s1130_s6 }
  0x19   :  { %p784_p10 = pnand %p782_p9, %p779_p8 }
  0x1b   :  { %787 = shalt.err (!%p784_p10)
}
  0x1c   :  { %s788_s1 = scalar_lea.vmem %s68_s18, 16  ;;  %s792_s22 = scalar_lea.vmem %s68_s18, 32 }
  0x1d   :  { %p789_p11 = scmp.ne.s32.totalorder %s68_s18, %s788_s1  ;;  %p793_p12 = scmp.lt.s32.totalorder %s68_s18, %s68_s18 }
  0x1e   :  { %p794_p13 = scmp.lt.s32.totalorder %s792_s22, %s788_s1 }
  0x20   :  { %p795_p0 = por %p794_p13, %p793_p12 }
  0x22   :  { %p796_p1 = pnand %p795_p0, %p789_p11 }
  0x24   :  { %799 = shalt.err (!%p796_p1)
}
  0x25   :  { %70 = dma.hbm_to_vmem [thread:$0]  %s1130_s6, 16, %s68_s18, [#allocation8]  }
  0x26   :  { %s800_s17 = scalar_lea.hbm %s1124_s0, 128 }
  0x27   :  { %p801_p2 = scmp.ne.s32.totalorder %s1124_s0, %s800_s17  ;;  %p804_p3 = scmp.lt.u32.totalorder %s800_s17, %s1124_s0 }
  0x29   :  { %p806_p4 = pnand %p804_p3, %p801_p2 }
  0x2b   :  { %809 = shalt.err (!%p806_p4)
}
  0x2c   :  { %s810_s25 = scalar_lea.vmem %s28_s20, 128  ;;  %p815_p6 = scmp.lt.s32.totalorder %s28_s20, %s28_s20 }
  0x2d   :  { %p811_p5 = scmp.ne.s32.totalorder %s28_s20, %s810_s25  ;;  %p816_p7 = scmp.lt.s32.totalorder %s810_s25, %s810_s25 }
  0x2f   :  { %p817_p8 = por %p816_p7, %p815_p6 }
  0x31   :  { %p818_p9 = pnand %p817_p8, %p811_p5 }
  0x33   :  { %821 = shalt.err (!%p818_p9)
}
  0x34   :  { %30 = dma.hbm_to_vmem [thread:$0]  %s1124_s0, 128, %s28_s20, [#allocation3]  }
  0x35   :  { %s901_s26 = smov [#allocation6]   ;;  %s902_s28 = smov [#allocation9]  }
  0x36   :  { %s54_s27 = sshll.u32 %s901_s26, 4  ;;  %s79_s1 = sshll.u32 %s902_s28, 4  ;;  %s55_s27 = int_to_ptr.vmem [resolvable:$true] %s54_s27  ;;  %s80_s1 = int_to_ptr.vmem [resolvable:$true] %s79_s1 }
  0x37   :  { %s822_s30 = scalar_lea.hbm %s1129_s5, 512 }
  0x38   :  { %p823_p10 = scmp.ne.s32.totalorder %s1129_s5, %s822_s30  ;;  %p826_p11 = scmp.lt.u32.totalorder %s822_s30, %s1129_s5 }
  0x3a   :  { %p828_p12 = pnand %p826_p11, %p823_p10 }
  0x3c   :  { %831 = shalt.err (!%p828_p12)
}
  0x3d   :  { %s832_s0 = scalar_lea.vmem %s55_s27, 512  ;;  %p837_p0 = scmp.lt.s32.totalorder %s55_s27, %s55_s27 }
  0x3e   :  { %p833_p13 = scmp.ne.s32.totalorder %s55_s27, %s832_s0  ;;  %p838_p1 = scmp.lt.s32.totalorder %s832_s0, %s832_s0 }
  0x40   :  { %p839_p2 = por %p838_p1, %p837_p0 }
  0x42   :  { %p840_p3 = pnand %p839_p2, %p833_p13 }
  0x44   :  { %843 = shalt.err (!%p840_p3)
}
  0x45   :  { %60 = dma.hbm_to_vmem [thread:$0]  %s1129_s5, 512, %s55_s27, [#allocation5], %s897_s13, %s897_s13, %s898_s14  }
  0x46   :  { %s844_s25 = scalar_lea.hbm %s1132_s8, 16 }
  0x47   :  { %p845_p4 = scmp.ne.s32.totalorder %s1132_s8, %s844_s25  ;;  %p848_p5 = scmp.lt.u32.totalorder %s844_s25, %s1132_s8 }
  0x49   :  { %p850_p6 = pnand %p848_p5, %p845_p4 }
  0x4b   :  { %853 = shalt.err (!%p850_p6)
}
  0x4c   :  { %s854_s22 = scalar_lea.vmem %s80_s1, 16  ;;  %s858_s29 = scalar_lea.vmem %s80_s1, 32 }
  0x4d   :  { %p855_p7 = scmp.ne.s32.totalorder %s80_s1, %s854_s22  ;;  %p859_p8 = scmp.lt.s32.totalorder %s80_s1, %s80_s1 }
  0x4e   :  { %p860_p9 = scmp.lt.s32.totalorder %s858_s29, %s854_s22 }
  0x50   :  { %p861_p10 = por %p860_p9, %p859_p8 }
  0x52   :  { %p862_p11 = pnand %p861_p10, %p855_p7 }
  0x54   :  { %865 = shalt.err (!%p862_p11)
}
  0x55   :  { %82 = dma.hbm_to_vmem [thread:$0]  %s1132_s8, 16, %s80_s1, [#allocation8]  }
  0x56   :  { %s903_s14 = smov [#allocation10]   ;;  %s866_s16 = scalar_lea.hbm %s1134_s10, 128 }
  0x57   :  { %s91_s27 = sshll.u32 %s903_s14, 4  ;;  %p867_p12 = scmp.ne.s32.totalorder %s1134_s10, %s866_s16  ;;  %s92_s27 = int_to_ptr.vmem [resolvable:$true] %s91_s27 }
  0x58   :  { %p870_p13 = scmp.lt.u32.totalorder %s866_s16, %s1134_s10 }
  0x5a   :  { %p872_p0 = pnand %p870_p13, %p867_p12 }
  0x5c   :  { %875 = shalt.err (!%p872_p0)
}
  0x5d   :  { %s876_s21 = scalar_lea.vmem %s92_s27, 128  ;;  %p881_p2 = scmp.lt.s32.totalorder %s92_s27, %s92_s27 }
  0x5e   :  { %p877_p1 = scmp.ne.s32.totalorder %s92_s27, %s876_s21  ;;  %p882_p3 = scmp.lt.s32.totalorder %s876_s21, %s876_s21 }
  0x60   :  { %p883_p4 = por %p882_p3, %p881_p2 }
  0x62   :  { %p884_p5 = pnand %p883_p4, %p877_p1 }
  0x64   :  { %887 = shalt.err (!%p884_p5)
}
  0x65   :  { %94 = dma.hbm_to_vmem [thread:$0]  %s1134_s10, 128, %s92_s27, [#allocation11]  }
  0x66   :  { %888 = dma.done.wait [#allocation3], 128  }
  0x67   :  { %889 = vsyncadd [#allocation3], 4294967168 }
  0x68   :  { %890 = dma.done.wait [#allocation5], 768  }
  0x69   :  { %891 = vsyncadd [#allocation5], 4294966528 }
  0x6a   :  { %892 = dma.done.wait [#allocation8], 32  }
  0x6b   :  { %893 = vsyncadd [#allocation8], 4294967264 }
  0x6c   :  { %894 = dma.done.wait [#allocation11], 128  }
  0x6d   :  { %895 = vsyncadd [#allocation11], 4294967168  ;;  %v904_v0 = vmov 0.0|0.0   ;;  %vm905_vm0 = vmmov 0   ;;  %v906_v1 = vmov 0.0   ;;  %v116_v2 = vld [vmem:[#allocation4] sm:$0xff] }
  0x6e   :  { %718 = vmatprep.subr.bf16.mxu0 %v904_v0  ;;  %666 = vmatprep.mubr.msk.f32.mxu0 %vm905_vm0, %v906_v1  ;;  %v117_v3 = vld [vmem:[#allocation4 + $0x8] sm:$0xff]  ;;  %v200_v5 = vld [vmem:[%s1127_s3] sm:$0xff]  ;;  %v201_v6 = vld [vmem:[%s1127_s3 + $0x8] sm:$0xff]  ;;  %vm125_vm1 = vcmask 130048   ;;  %vm211_vm2 = vcmask 261120   ;;  %vm542_vm3 = vcmask 64512  }
  0x6f   :  { %721 = vmatprep.subr.bf16.mxu1 %v904_v0  ;;  %677 = vmatprep.mubr.msk.f32.mxu1 %vm905_vm0, %v906_v1  ;;  %v719_v4 = vpack.c.bf16 %v117_v3, %v116_v2  ;;  %v722_v7 = vpack.c.bf16 %v201_v6, %v200_v5  ;;  %v115_v8 = vld [vmem:[#allocation2] sm:$0xff]  ;;  %v202_v9 = vld [vmem:[%s1127_s3 + $0x10] sm:$0xff]  ;;  %v203_v10 = vld [vmem:[%s1127_s3 + $0x18] sm:$0xff]  ;;  %vm616_vm4 = vcmask 195584  }
  0x70   :  { %v725_v11 = vpack.c.bf16 %v203_v10, %v202_v9  ;;  %v286_v12 = vld [vmem:[#allocation6] sm:$0xff]  ;;  %v287_v13 = vld [vmem:[#allocation6 + $0x8] sm:$0xff]  ;;  %v288_v20 = vld [vmem:[#allocation6 + $0x10] sm:$0xff] }
  0x71   :  { %720 = vmatpush3.bf16.msra.mxu0 %v719_v4  ;;  %723 = vmatpush3.bf16.msra.mxu1 %v722_v7  ;;  %v728_v14 = vpack.c.bf16 %v287_v13, %v286_v12  ;;  %v626_v15 = vld [vmem:[%s1126_s2] ss:$0 sm:$0xff]  ;;  %v289_v21 = vld [vmem:[#allocation6 + $0x18] sm:$0xff]  ;;  %v372_v24 = vld [vmem:[%s1131_s7 + $0x8] sm:$0xff] }
  0x72   :  { %727 = vmatprep.subr.bf16.mxu0 %v904_v0  ;;  %724 = vmatprep.subr.bf16.mxu1 %v904_v0  ;;  %v731_v22 = vpack.c.bf16 %v289_v21, %v288_v20  ;;  %v371_v23 = vld [vmem:[%s1131_s7] sm:$0xff]  ;;  %v373_v31 = vld [vmem:[%s1131_s7 + $0x10] sm:$0xff]  ;;  %v374_v32 = vld [vmem:[%s1131_s7 + $0x18] sm:$0xff] }
  0x73   :  { %v734_v25 = vpack.c.bf16 %v372_v24, %v371_v23  ;;  %v628_v26 = vld [vmem:[%s1128_s4] ss:$0 sm:$0xff]  ;;  %v737_v33 = vpack.c.bf16 %v374_v32, %v373_v31  ;;  %v457_v35 = vld [vmem:[%s1133_s9 + $0x8] sm:$0xff]  ;;  %v630_v37 = vld [vmem:[#allocation7] ss:$0 sm:$0xff] }
  0x74   :  { %667 = vmatmul.mubr.msk.f32.vlgmr.msra.gmra.mrb[0].mxu0 %vm125_vm1, %v115_v8  ;;  %v456_v34 = vld [vmem:[%s1133_s9] sm:$0xff]  ;;  %v458_v42 = vld [vmem:[%s1133_s9 + $0x10] sm:$0xff]  ;;  %v459_v43 = vld [vmem:[%s1133_s9 + $0x18] sm:$0xff] }
  0x75   :  { %688 = vmatprep.mubr.msk.f32.mxu0 %vm905_vm0, %v906_v1  ;;  %726 = vmatpush3.bf16.msra.mxu1 %v725_v11  ;;  %v740_v36 = vpack.c.bf16 %v457_v35, %v456_v34  ;;  %v743_v44 = vpack.c.bf16 %v459_v43, %v458_v42  ;;  %v534_v45 = vld [vmem:[#allocation10] sm:$0xff]  ;;  %v632_v46 = vld [vmem:[#allocation9] ss:$0 sm:$0xff] }
  0x76   :  { %733 = vmatprep.subr.bf16.mxu1 %v904_v0  ;;  %729 = vmatpush3.bf16.msra.mxu0 %v728_v14  ;;  %v635_v54 = vld [vmem:[%s1135_s11] ss:$0 sm:$0xff] }
  0x77   :  { %730 = vmatprep.subr.bf16.mxu0 %v904_v0 }
  0x7a   :  { %732 = vmatpush3.bf16.msra.mxu0 %v731_v22 }
  0x7b   :  { %739 = vmatprep.subr.bf16.mxu0 %v904_v0 }
 0x147   :  { %v195_v16 = vpop.f32.mrb[0].mxu0 }
 0x148   :  { %v196_v17 = vadd.f32 %v626_v15, %v195_v16  ;;  %v668_v18 = vpop.f32.mrb[1].mxu0 }
 0x14a   :  { %v199_v19 = vmax.f32 %v196_v17, 0.0 }
 0x14c   :  { %678 = vmatmul.mubr.msk.f32.vlgmr.msra.gmra.mrb[0].mxu1 %vm211_vm2, %v199_v19 }
 0x14d   :  { %699 = vmatprep.mubr.msk.f32.mxu1 %vm905_vm0, %v906_v1  ;;  %735 = vmatpush3.bf16.msra.mxu1 %v734_v25 }
 0x14e   :  { %736 = vmatprep.subr.bf16.mxu1 %v904_v0 }
 0x151   :  { %738 = vmatpush3.bf16.msra.mxu1 %v737_v33 }
 0x152   :  { %713 = vmatprep.subr.mxu1 %v906_v1 }
 0x21f   :  { %v281_v27 = vpop.f32.mrb[0].mxu1 }
 0x220   :  { %v282_v28 = vadd.f32 %v628_v26, %v281_v27  ;;  %v679_v29 = vpop.f32.mrb[1].mxu1 }
 0x222   :  { %v285_v30 = vmax.f32 %v282_v28, 0.0 }
 0x224   :  { %689 = vmatmul.mubr.msk.f32.vlgmr.msra.gmra.mrb[2].mxu0 %vm211_vm2, %v285_v30 }
 0x225   :  { %710 = vmatprep.mubr.msk.f32.mxu0 %vm905_vm0, %v906_v1  ;;  %741 = vmatpush3.bf16.msra.mxu0 %v740_v36 }
 0x226   :  { %742 = vmatprep.subr.bf16.mxu0 %v904_v0 }
 0x229   :  { %744 = vmatpush3.bf16.msra.mxu0 %v743_v44 }
 0x2f7   :  { %v366_v38 = vpop.f32.mrb[2].mxu0 }
 0x2f8   :  { %v367_v39 = vadd.f32 %v630_v37, %v366_v38  ;;  %v690_v40 = vpop.f32.mrb[3].mxu0 }
 0x2fa   :  { %v370_v41 = vmax.f32 %v367_v39, 0.0 }
 0x2fc   :  { %700 = vmatmul.mubr.msk.f32.vlgmr.msra.gmra.mrb[2].mxu1 %vm211_vm2, %v370_v41 }
 0x2fd   :  { %715 = vmatprep.mubr.msk.f32.mxu1 %vm905_vm0, %v906_v1  ;;  %714 = vmatpush3.msra.mxu1 %v534_v45 }
 0x3cf   :  { %v451_v47 = vpop.f32.mrb[2].mxu1 }
 0x3d0   :  { %v452_v48 = vadd.f32 %v632_v46, %v451_v47  ;;  %v701_v49 = vpop.f32.mrb[3].mxu1 }
 0x3d2   :  { %v455_v50 = vmax.f32 %v452_v48, 0.0 }
 0x3d4   :  { %711 = vmatmul.mubr.msk.f32.vlgmr.msra.gmra.mrb[4].mxu0 %vm211_vm2, %v455_v50 }
 0x4a7   :  { %v529_v51 = vpop.f32.mrb[4].mxu0 }
 0x4a8   :  { %v533_v52 = vmax.f32 %v529_v51, 0.0  ;;  %v712_v53 = vpop.f32.mrb[5].mxu0 }
 0x4aa   :  { %716 = vmatmul.mubr.msk.f32.vlgmr.msra.gmra.mrb[4].mxu1 %vm542_vm3, %v533_v52 }
 0x57d   :  { %v612_v55 = vpop.f32.mrb[4].mxu1 }
 0x57e   :  { %v613_v56 = vadd.f32 %v635_v54, %v612_v55  ;;  %v717_v57 = vpop.f32.mrb[5].mxu1 }
 0x580   :  { %617 = vst.msk [vmem:[%s1136_s12] sm:$0xff] %vm616_vm4, %v613_v56 }
 0x581   :  { %622 = vsyncpa [#allocation3], 1 }
 0x582   :  { %623 = vsyncpa [#allocation5], 1 }
 0x583   :  { %624 = vsyncpa [#allocation8], 1 }
 0x584   :  { %625 = vsyncpa [#allocation11], 1 }

</bundles_post_ra>
